<compile_context>
chip_gen: v6e
topology: v6e:2x2x1
jax: 0.10.0
libtpu: 0.0.40
codegen_flags: <defaults>
</compile_context>

<pallas_src>
import functools

import jax
import jax.numpy as jnp
from jax.experimental import pallas as pl
from jax.experimental.pallas import tpu as pltpu


# ----------------------------------------------------------------------------
# small helpers
# ----------------------------------------------------------------------------
def _swap_leading(x):
    """(A, B, Dh) -> (B, A, Dh) relayout (minor dim unchanged).

    pltpu.einshape is lane-layout aware and preferred; fall back to a plain
    transpose on JAX versions without it.
    """
    if hasattr(pltpu, "einshape"):
        return pltpu.einshape("abd->bad", x)
    return jnp.transpose(x, (1, 0, 2))


def _single_buffered_spec(block_shape, index_map):
    """BlockSpec for grid-invariant (weight) operands.

    Single-buffer them (their index_map is constant across the grid) so the
    pipeline does not allocate 2x their VMEM footprint.  Falls back to the
    default double-buffering on JAX versions without pipeline_mode/Buffered.
    """
    try:
        return pl.BlockSpec(block_shape, index_map, pipeline_mode=pl.Buffered(1))
    except (AttributeError, TypeError):
        return pl.BlockSpec(block_shape, index_map)


def _vmem_limit_bytes(N, D, H, Dh, io_itemsize):
    """Per-step VMEM estimate from the actual block sizes, capped per device."""
    inner = H * Dh
    bf16, f32 = 2, 4
    weights = 4 * inner * D * bf16 + D * f32            # bf16 weights (single-buffered) + f32 bias
    io = 2 * 2 * N * D * io_itemsize                    # fr + out blocks, double-buffered
    interm = (N * 3 * inner) * 2 * f32                  # qkv2d + head-split relayout copy
    interm += 3 * (H * N * Dh) * bf16                   # q, k, v (bf16)
    interm += 2 * (H * N * N) * f32                     # scores + probs (f32)
    interm += 2 * (H * N * Dh) * f32                    # acc + normalized out
    interm += (N * inner) * (f32 + bf16)                # merged heads
    need = weights + io + interm
    try:
        cap = int(0.85 * pltpu.get_tpu_info().vmem_capacity_bytes)
    except Exception:
        cap = 64 << 20                                  # conservative fallback
    return int(min(max(2 * need, 32 << 20), cap))


# ----------------------------------------------------------------------------
# kernel
# ----------------------------------------------------------------------------
def attention_kernel(fr_ref, wqkv_ref, wout_ref, bout_ref, o_ref, *, n_head, head_dim):
    H, Dh = n_head, head_dim
    inner = H * Dh
    x = fr_ref[0]                                       # (N, D)
    N, D = x.shape
    mm = jnp.bfloat16                                   # MXU-operand dtype; accumulate in f32

    # --- single lane-dense QKV projection (scale pre-folded into Wq) --------
    # Wqkv is host-packed (D, 3*inner) = [scale*Wq | Wk | Wv], already bf16.
    qkv2d = jnp.dot(x.astype(mm), wqkv_ref[...],
                    preferred_element_type=jnp.float32)          # (N, 3*inner) f32

    # --- head split: 'n (g d) -> g n d' (one relayout, XLU-side) ------------
    qkv = _swap_leading(qkv2d.reshape(N, 3 * H, Dh))             # (3H, N, Dh) f32
    q = qkv[:H].astype(mm)                                       # (H, N, Dh), scale folded in
    k = qkv[H:2 * H].astype(mm)
    v = qkv[2 * H:].astype(mm)

    # --- head-batched scaled dot-product attention; softmax math in f32 -----
    # K is consumed untransposed (contraction on its last dim).
    s = jnp.einsum("hqd,hkd->hqk", q, k,
                   preferred_element_type=jnp.float32)           # (H, N, N) f32
    m = jnp.max(s, axis=-1, keepdims=True)
    p = jnp.exp(s - m)
    l = jnp.sum(p, axis=-1, keepdims=True)                       # (H, N, 1)
    acc = jnp.einsum("hqk,hkd->hqd", p.astype(mm), v,
                     preferred_element_type=jnp.float32)         # (H, N, Dh) f32
    # Normalization deferred past P@V; approximate reciprocal runs on the EUP.
    out_h = acc * pl.reciprocal(l, approx=True)                  # (H, N, Dh) f32

    # --- merge heads 'h n d -> n (h d)' + single lane-dense output proj -----
    out2d = _swap_leading(out_h).reshape(N, inner).astype(mm)    # (N, inner) bf16
    y = jnp.dot(out2d, wout_ref[...],
                preferred_element_type=jnp.float32)              # (N, D) f32
    o_ref[0] = (y + bout_ref[...]).astype(o_ref.dtype)


# ----------------------------------------------------------------------------
# wrapper
# ----------------------------------------------------------------------------
def attention_pallas(fr, wq, wkv, wout, bout, *, n_head, head_dim):
    B, N, D = fr.shape
    H, Dh = n_head, head_dim
    inner = H * Dh
    assert wq.shape == (D, inner) and wkv.shape == (D, 2 * inner)
    assert wout.shape == (inner, D) and bout.shape == (D,)
    scale = Dh ** (-0.5)

    # ---- one-time host-side packing (layout plumbing, not compute) ---------
    # Fold the softmax scale into Wq BEFORE the bf16 cast; pack all three
    # projections column-wise so the kernel runs one (N,D)x(D,3*inner) matmul.
    wqkv = jnp.concatenate([wq * scale, wkv], axis=1).astype(jnp.bfloat16)  # (D, 3*inner)
    wout_c = wout.astype(jnp.bfloat16)                                       # (inner, D)
    bout2 = bout.reshape(1, D).astype(jnp.float32)                           # (1, D)

    kernel = functools.partial(attention_kernel, n_head=H, head_dim=Dh)

    flops = 2 * B * (4 * N * D * inner + 2 * H * N * N * Dh)
    bytes_accessed = (2 * B * N * D * fr.dtype.itemsize      # fr read + out write
                      + 4 * inner * D * 2                    # bf16 weights
                      + D * 4)                               # f32 bias
    cost = pl.CostEstimate(flops=flops,
                           transcendentals=B * H * N * N,
                           bytes_accessed=bytes_accessed)

    return pl.pallas_call(
        kernel,
        out_shape=jax.ShapeDtypeStruct((B, N, D), fr.dtype),
        grid_spec=pltpu.PrefetchScalarGridSpec(
            num_scalar_prefetch=0,
            grid=(B,),                                                   # parallel over batch
            in_specs=[
                pl.BlockSpec((1, N, D), lambda b: (b, 0, 0)),            # fr[b]
                _single_buffered_spec((D, 3 * inner), lambda b: (0, 0)),  # packed QKV weights
                _single_buffered_spec((inner, D), lambda b: (0, 0)),      # output projection
                _single_buffered_spec((1, D), lambda b: (0, 0)),          # output bias
            ],
            out_specs=pl.BlockSpec((1, N, D), lambda b: (b, 0, 0)),
        ),
        compiler_params=pltpu.CompilerParams(
            dimension_semantics=("parallel",),
            vmem_limit_bytes=_vmem_limit_bytes(N, D, H, Dh, fr.dtype.itemsize),
        ),
        cost_estimate=cost,
    )(fr, wqkv, wout_c, bout2)


# ----------------------------------------------------------------------------
# pure-JAX reference (mirrors the PyTorch forward, f32)
# ----------------------------------------------------------------------------
def attention_reference(fr, wq, wkv, wout, bout, *, n_head, head_dim):
    B, N, D = fr.shape
    inner = n_head * head_dim
    scale = head_dim ** (-0.5)
    q = fr @ wq
    kv = fr @ wkv
    k, v = kv[..., :inner], kv[..., inner:]

    def split_heads(t):                    # 'b n (h d) -> b h n d'
        return t.reshape(B, N, n_head, head_dim).transpose(0, 2, 1, 3)

    q, k, v = map(split_heads, (q, k, v))
    dots = jnp.einsum("bhqd,bhkd->bhqk", q, k) * scale
    attn = jax.nn.softmax(dots, axis=-1)
    out = jnp.einsum("bhqk,bhkd->bhqd", attn, v)
    out = out.transpose(0, 2, 1, 3).reshape(B, N, inner)   # 'b h n d -> b n (h d)'
    return out @ wout + bout


if __name__ == "__main__":
    # Small shapes consistent with the module's forward.
    B, N, D = 2, 8, 32          # batch, seq, dim
    n_head, head_dim = 2, 16    # inner_dim = 32
    inner = n_head * head_dim

    key = jax.random.PRNGKey(0)
    k_fr, k_q, k_kv, k_o, k_b = jax.random.split(key, 5)

    fr = jax.random.normal(k_fr, (B, N, D), dtype=jnp.float32)
    wq = jax.random.normal(k_q, (D, inner), dtype=jnp.float32) * (D ** -0.5)
    wkv = jax.random.normal(k_kv, (D, 2 * inner), dtype=jnp.float32) * (D ** -0.5)
    wout = jax.random.normal(k_o, (inner, D), dtype=jnp.float32) * (inner ** -0.5)
    bout = jax.random.normal(k_b, (D,), dtype=jnp.float32) * 0.2

    out = attention_pallas(fr, wq, wkv, wout, bout,
                           n_head=n_head, head_dim=head_dim)
    out = jax.block_until_ready(out)

    ref = attention_reference(fr, wq, wkv, wout, bout,
                              n_head=n_head, head_dim=head_dim)
    assert out.shape == (B, N, D)
    # Tolerance covers bf16 MXU operands (f32 accumulation) and the EUP
    # approximate-reciprocal softmax normalization vs. the all-f32 reference.
    assert jnp.allclose(out, ref, atol=5e-2, rtol=5e-2), "mismatch vs reference"

    print("KERNEL_OK")
</pallas_src>

<mosaic_0001>
module attributes {stable_mosaic.version = 11 : i64} {
  func.func @attention_kernel(%arg0: i32, %arg1: memref<1x8x32xf32, #tpu.memory_space<vmem>>, %arg2: memref<32x96xbf16, #tpu.memory_space<vmem>>, %arg3: memref<32x32xbf16, #tpu.memory_space<vmem>>, %arg4: memref<1x32xf32, #tpu.memory_space<vmem>>, %arg5: memref<1x8x32xf32, #tpu.memory_space<vmem>>) attributes {dimension_semantics = [#tpu.dimension_semantics<parallel>], iteration_bounds = array<i64: 2>, scalar_prefetch = 0 : i64, scratch_operands = 0 : i64, tpu.core_type = #tpu.core_type<tc>, window_params = [{transform_indices = @transform_0, window_bounds = array<i64: 1, 8, 32>}, {pipeline_mode = #tpu.pipeline_mode<synchronous>, transform_indices = @transform_1, window_bounds = array<i64: 32, 96>}, {pipeline_mode = #tpu.pipeline_mode<synchronous>, transform_indices = @transform_2, window_bounds = array<i64: 32, 32>}, {pipeline_mode = #tpu.pipeline_mode<synchronous>, transform_indices = @transform_3, window_bounds = array<i64: 1, 32>}, {transform_indices = @transform_4, window_bounds = array<i64: 1, 8, 32>}]} {
    %c0 = arith.constant 0 : index
    %c0_0 = arith.constant 0 : index
    %c0_1 = arith.constant 0 : index
    %0 = vector.load %arg1[%c0, %c0_0, %c0_1] : memref<1x8x32xf32, #tpu.memory_space<vmem>>, vector<1x8x32xf32>
    %1 = vector.shape_cast %0 : vector<1x8x32xf32> to vector<8x32xf32>
    %2 = arith.truncf %1 : vector<8x32xf32> to vector<8x32xbf16>
    %c0_2 = arith.constant 0 : index
    %c0_3 = arith.constant 0 : index
    %3 = vector.load %arg2[%c0_2, %c0_3] : memref<32x96xbf16, #tpu.memory_space<vmem>>, vector<32x96xbf16>
    %cst = arith.constant dense<0.000000e+00> : vector<8x96xf32>
    %4 = tpu.matmul %2, %3, %cst {dimension_numbers = #tpu.dot_dimension_numbers<[1], [0], [0], [1], [0, 0, 1, 1], [], []>} : vector<8x32xbf16>, vector<32x96xbf16>, vector<8x96xf32> -> vector<8x96xf32>
    %5 = vector.shape_cast %4 : vector<8x96xf32> to vector<8x6x16xf32>
    %6 = tpu.transpose %5, [1, 0, 2] : vector<8x6x16xf32> -> vector<6x8x16xf32>
    %7 = vector.extract_strided_slice %6 {offsets = [0, 0, 0], sizes = [2, 8, 16], strides = [1, 1, 1]} : vector<6x8x16xf32> to vector<2x8x16xf32>
    %8 = arith.truncf %7 : vector<2x8x16xf32> to vector<2x8x16xbf16>
    %9 = vector.extract_strided_slice %6 {offsets = [2, 0, 0], sizes = [2, 8, 16], strides = [1, 1, 1]} : vector<6x8x16xf32> to vector<2x8x16xf32>
    %10 = arith.truncf %9 : vector<2x8x16xf32> to vector<2x8x16xbf16>
    %11 = vector.extract_strided_slice %6 {offsets = [4, 0, 0], sizes = [2, 8, 16], strides = [1, 1, 1]} : vector<6x8x16xf32> to vector<2x8x16xf32>
    %12 = arith.truncf %11 : vector<2x8x16xf32> to vector<2x8x16xbf16>
    "tpu.trace_start"() <{level = 10 : i32, message = "hqd,hkd->hqk"}> : () -> ()
    %cst_4 = arith.constant dense<0.000000e+00> : vector<2x8x8xf32>
    %13 = tpu.matmul %8, %10, %cst_4 {dimension_numbers = #tpu.dot_dimension_numbers<[2], [2], [1], [1], [0, 0, 0, 1, 1, 1], [0], [0]>} : vector<2x8x16xbf16>, vector<2x8x16xbf16>, vector<2x8x8xf32> -> vector<2x8x8xf32>
    "tpu.trace_stop"() : () -> ()
    %cst_5 = arith.constant dense<0xFF800000> : vector<2x8xf32>
    %14 = vector.multi_reduction <maximumf>, %13, %cst_5 [2] : vector<2x8x8xf32> to vector<2x8xf32>
    %15 = vector.shape_cast %14 : vector<2x8xf32> to vector<2x8x1xf32>
    %16 = vector.broadcast %15 : vector<2x8x1xf32> to vector<2x8x8xf32>
    %17 = arith.subf %13, %16 : vector<2x8x8xf32>
    %18 = math.exp %17 : vector<2x8x8xf32>
    %cst_6 = arith.constant dense<0.000000e+00> : vector<2x8xf32>
    %19 = vector.multi_reduction <add>, %18, %cst_6 [2] : vector<2x8x8xf32> to vector<2x8xf32>
    %20 = vector.shape_cast %19 : vector<2x8xf32> to vector<2x8x1xf32>
    %21 = arith.truncf %18 : vector<2x8x8xf32> to vector<2x8x8xbf16>
    "tpu.trace_start"() <{level = 10 : i32, message = "hqk,hkd->hqd"}> : () -> ()
    %cst_7 = arith.constant dense<0.000000e+00> : vector<2x8x16xf32>
    %22 = tpu.matmul %21, %12, %cst_7 {dimension_numbers = #tpu.dot_dimension_numbers<[2], [1], [1], [2], [0, 0, 0, 1, 1, 2], [0], [0]>} : vector<2x8x8xbf16>, vector<2x8x16xbf16>, vector<2x8x16xf32> -> vector<2x8x16xf32>
    "tpu.trace_stop"() : () -> ()
    %23 = tpu.reciprocal %20 {approx = true} : vector<2x8x1xf32> -> vector<2x8x1xf32>
    %24 = vector.broadcast %23 : vector<2x8x1xf32> to vector<2x8x16xf32>
    %25 = arith.mulf %22, %24 : vector<2x8x16xf32>
    %26 = tpu.transpose %25, [1, 0, 2] : vector<2x8x16xf32> -> vector<8x2x16xf32>
    %27 = vector.shape_cast %26 : vector<8x2x16xf32> to vector<8x32xf32>
    %28 = arith.truncf %27 : vector<8x32xf32> to vector<8x32xbf16>
    %c0_8 = arith.constant 0 : index
    %c0_9 = arith.constant 0 : index
    %29 = vector.load %arg3[%c0_8, %c0_9] : memref<32x32xbf16, #tpu.memory_space<vmem>>, vector<32x32xbf16>
    %cst_10 = arith.constant dense<0.000000e+00> : vector<8x32xf32>
    %30 = tpu.matmul %28, %29, %cst_10 {dimension_numbers = #tpu.dot_dimension_numbers<[1], [0], [0], [1], [0, 0, 1, 1], [], []>} : vector<8x32xbf16>, vector<32x32xbf16>, vector<8x32xf32> -> vector<8x32xf32>
    %c0_11 = arith.constant 0 : index
    %c0_12 = arith.constant 0 : index
    %31 = vector.load %arg4[%c0_11, %c0_12] : memref<1x32xf32, #tpu.memory_space<vmem>>, vector<1x32xf32>
    %32 = vector.broadcast %31 : vector<1x32xf32> to vector<8x32xf32>
    %33 = arith.addf %30, %32 : vector<8x32xf32>
    %c0_13 = arith.constant 0 : index
    %c0_14 = arith.constant 0 : index
    %c0_15 = arith.constant 0 : index
    %34 = vector.load %arg5[%c0_13, %c0_14, %c0_15] : memref<1x8x32xf32, #tpu.memory_space<vmem>>, vector<1x8x32xf32>
    %35 = vector.shape_cast %34 : vector<1x8x32xf32> to vector<8x32xf32>
    %36 = vector.shape_cast %33 : vector<8x32xf32> to vector<1x8x32xf32>
    tpu.vector_store %arg5[%c0_13, %c0_14, %c0_15], %36 {strides = array<i32>} : memref<1x8x32xf32, #tpu.memory_space<vmem>>, vector<1x8x32xf32>,
    return
  }
  func.func @transform_0(%arg0: i32) -> (i32, i32, i32) {
    %c0_i32 = arith.constant 0 : i32
    %c0_i32_0 = arith.constant 0 : i32
    %c0_i32_1 = arith.constant 0 : i32
    return %arg0, %c0_i32, %c0_i32_0 : i32, i32, i32
  }
  func.func @transform_1(%arg0: i32) -> (i32, i32) {
    %c0_i32 = arith.constant 0 : i32
    %c0_i32_0 = arith.constant 0 : i32
    %c0_i32_1 = arith.constant 0 : i32
    return %c0_i32, %c0_i32_0 : i32, i32
  }
  func.func @transform_2(%arg0: i32) -> (i32, i32) {
    %c0_i32 = arith.constant 0 : i32
    %c0_i32_0 = arith.constant 0 : i32
    %c0_i32_1 = arith.constant 0 : i32
    return %c0_i32, %c0_i32_0 : i32, i32
  }
  func.func @transform_3(%arg0: i32) -> (i32, i32) {
    %c0_i32 = arith.constant 0 : i32
    %c0_i32_0 = arith.constant 0 : i32
    %c0_i32_1 = arith.constant 0 : i32
    return %c0_i32, %c0_i32_0 : i32, i32
  }
  func.func @transform_4(%arg0: i32) -> (i32, i32, i32) {
    %c0_i32 = arith.constant 0 : i32
    %c0_i32_0 = arith.constant 0 : i32
    %c0_i32_1 = arith.constant 0 : i32
    return %arg0, %c0_i32, %c0_i32_0 : i32, i32, i32
  }
}

</mosaic_0001>

<bundles_post_ra>
// kernel: tpu_custom_call.1
= control target key start
LH: loop header
LB: loop body
LE: loop exit
PB: predicated region body
PF: predicated region fallthrough
CT: control target
= control target key end

     0   :  { %9 = vsyncpa [#allocation3], 0  ;;  %s1734_s0 = inlined_call_operand.hbm [shape: f32[2,8,32], index: 0, kind: input, shape index: {}]   ;;  %s1735_s1 = inlined_call_operand.hbm [shape: bf16[32,96], index: 1, kind: input, shape index: {}]   ;;  %s1736_s2 = inlined_call_operand.hbm [shape: bf16[32,32], index: 2, kind: input, shape index: {}]   ;;  %s1737_s3 = inlined_call_operand.vmem [shape: f32[1,32], index: 3, kind: input, shape index: {}]   ;;  %s1738_s4 = inlined_call_operand.hbm [shape: f32[2,8,32], index: 4, kind: output, shape index: {}]  }
   0x1   :  { %11 = vsyncpa [#allocation3 + $0x1], 0 }
   0x2   :  { %12 = vsyncpa [#allocation6], 0 }
   0x3   :  { %13 = vsyncpa [#allocation4], 0 }
   0x4   :  { %15 = vsyncpa [#allocation4 + $0x1], 0  ;;  %s1455_s15 = smov 0   ;;  %s1457_s16 = smov 0  }
   0x5   :  { %s1459_s17 = smov 0   ;;  %s1461_s18 = smov 0  }
   0x6 LB: > { %s1476_s19 = sadd.s32 4294967295, %s1412_s18   ;;  %s1082_s20 = sadd.s32 4294967294, %s1412_s18   ;;  %s1412_s18 = sphi %s1461_s18, %s1760_s18   ;;  %s1408_s17 = sphi %s1459_s17, %s1759_s17   ;;  %s1404_s16 = sphi %s1457_s16, %s1758_s16   ;;  %s1400_s15 = sphi %s1455_s15, %s1757_s15  }
   0x7   : > { %p41_p0 = scmp.ne.s32.totalorder %s1404_s16, %s1400_s15  ;;  %p1739_p1 = scmp.eq.s32.totalorder %s1476_s19, 0 }
   0x8   : > { %p134_p3 = scmp.eq.s32.totalorder %s1082_s20, 1  ;;  %p1083_p5 = scmp.ge.s32.totalorder %s1412_s18, 1 }
   0x9   : > { %p1485_p4 = por %p1739_p1, %p41_p0  ;;  %p141_p7 = scmp.lt.s32.totalorder %s1412_s18, 3 }
   0xa   : > { %p1490_p6 = por %p134_p3, %p41_p0  ;;  %s1414_s24 = smov [#allocation5]  }
   0xb   : > { %s1743_s21 = scalar_select %p1485_p4, 1, 0 }
   0xc   : > { %s1744_s22 = scalar_select %p1490_p6, 1, 0 }
   0xd   : > { %p1495_p8 = pnand %p1083_p5, %p141_p7  ;;  %s153_s25 = sshll.u32 %s1414_s24, 4  ;;  %s154_s25 = int_to_ptr.vmem [resolvable:$true] %s153_s25 }
   0xe   : > { %s1415_s27 = smov [#allocation7]   ;;  %s1275_s29 = scalar_lea.vmem %s154_s25, 256 }
   0xf   : > { %s1745_s23 = scalar_select %p1495_p8, 1, 0 }
  0x10   : > { %p1185_p9 = pneg %p1495_p8  ;;  %s166_s28 = sshll.u32 %s1415_s27, 4  ;;  %s167_s28 = int_to_ptr.vmem [resolvable:$true] %s166_s28 }
  0x11   : > { %p1276_p13 = scmp.ne.s32.totalorder %s154_s25, %s1275_s29  ;;  %p1283_p5 = scmp.lt.s32.totalorder %s154_s25, %s154_s25 }
  0x12   : > { %p1504_p11 = pnand %p1185_p9, %p1739_p1  ;;  %p1284_p7 = scmp.lt.s32.totalorder %s1275_s29, %s1275_s29 }
  0x14   : > { %p1266_p12 = pneg %p1504_p11  ;;  %p1285_p10 = por %p1284_p7, %p1283_p5 }
  0x16   : > { %p1278_p0 = pnand %p1276_p13, %p1266_p12 }
  0x18   : > { %p1279_p3 = pneg %p1278_p0 }
  0x1a   : > { %p1286_p9 = pnand %p1285_p10, %p1279_p3 }
  0x1c   : > { %1289 = shalt.err (!%p1286_p9)
}
  0x1d   : > { %s1416_s30 = smov 64   ;;  %s1417_s5 = smov 4  }
  0x1e   : > { %1188 = dma.hbm_to_vmem [thread:$0]  (!%p1504_p11), %s1735_s1, 256, %s154_s25, [#allocation6], %s1416_s30, %s1416_s30, %s1417_s5  }
  0x1f   : > { %s1301_s8 = scalar_lea.vmem %s167_s28, 256  ;;  %p1309_p2 = scmp.lt.s32.totalorder %s167_s28, %s167_s28 }
  0x20   : > { %p1302_p1 = scmp.ne.s32.totalorder %s167_s28, %s1301_s8  ;;  %p1310_p6 = scmp.lt.s32.totalorder %s1301_s8, %s1301_s8 }
  0x22   : > { %p1304_p13 = pnand %p1302_p1, %p1266_p12  ;;  %p1311_p5 = por %p1310_p6, %p1309_p2 }
  0x24   : > { %p1305_p0 = pneg %p1304_p13 }
  0x26   : > { %p1312_p10 = pnand %p1311_p5, %p1305_p0 }
  0x28   : > { %1315 = shalt.err (!%p1312_p10)
}
  0x29   : > { %1191 = dma.hbm_to_vmem [thread:$0]  (!%p1504_p11), %s1736_s2, 256, %s167_s28, [#allocation6], %s1416_s30, %s1416_s30, %s1417_s5  }
  0x2a   : > { %s1527_s11 = sadd.s32 1, %s1412_s18   ;;  %s28_s12 = sadd.s32 1, %s1408_s17 }
  0x2b   : > { %s25_s13 = ssub.s32 %s1412_s18, %s1527_s11  ;;  %p35_p1 = scmp.ne.s32.totalorder %s1408_s17, %s1404_s16 }
  0x2c   : > { %p26_p2 = scmp.eq.s32.totalorder %s25_s13, 0  ;;  %p36_p6 = scmp.eq.s32.totalorder %s1412_s18, 0 }
  0x2d   : > { %p1747_p12 = scmp.eq.s32.totalorder %s1476_s19, 1  ;;  %p1202_p7 = scmp.lt.s32.totalorder %s1412_s18, 2 }
  0x2e   : > { %s1543_s20 = scalar_select %p26_p2, %s1408_s17, %s28_s12  }
  0x2f   : > { %p1537_p3 = por %p1747_p12, %p35_p1  ;;  %p37_p9 = por %p36_p6, %p35_p1 }
  0x30   : > { %s183_s24 = sand.u32 1, %s1408_s17   ;;  %s1088_s26 = sshll.u32 %s1412_s18, 7 }
  0x31   : > { %s1748_s14 = scalar_select %p1537_p3, 1, 0 }
  0x32   : > { %s1087_s25 = sshll.u32 %s183_s24, 3  ;;  %s1550_s29 = scalar_lea.hbm %s1734_s0, %s1088_s26 }
  0x33   : > { %s187_s30 = scalar_lea.vmem [#allocation2], %s1087_s25  ;;  %p1552_p11 = pnand %p1202_p7, %p37_p9 }
  0x34   : > { %s194_s5 = sshll.u32 %s187_s30, 4  ;;  %s184_s7 = scalar_lea.sflag [#allocation3], %s183_s24  ;;  %s195_s5 = int_to_ptr.vmem [resolvable:$true] %s194_s5 }
  0x35   : > { %s1316_s8 = scalar_lea.hbm %s1550_s29, 128  ;;  %p1318_p0 = pneg %p1552_p11 }
  0x36   : > { %p1317_p13 = scmp.ne.s32.totalorder %s1550_s29, %s1316_s8  ;;  %s1321_s12 = scalar_lea.hbm %s1734_s0, 256 }
  0x37   : > { %p1322_p1 = scmp.lt.s32.totalorder %s1550_s29, %s1734_s0  ;;  %p1323_p2 = scmp.lt.s32.totalorder %s1321_s12, %s1316_s8 }
  0x38   : > { %p1319_p5 = pnand %p1318_p0, %p1317_p13 }
  0x39   : > { %p1324_p6 = por %p1323_p2, %p1322_p1 }
  0x3a   : > { %p1320_p10 = pneg %p1319_p5 }
  0x3c   : > { %p1325_p12 = pnand %p1324_p6, %p1320_p10 }
  0x3e   : > { %1328 = shalt.err (!%p1325_p12)
}
  0x3f   : > { %s1329_s26 = scalar_lea.vmem %s195_s5, 128  ;;  %s1418_s24 = smov [#allocation2]  }
  0x40   : > { %p1330_p7 = scmp.ne.s32.totalorder %s195_s5, %s1329_s26  ;;  %s1334_s27 = sshll.u32 %s1418_s24, 4  ;;  %s1335_s27 = int_to_ptr.vmem [resolvable:$false] %s1334_s27 }
  0x41   : > { %s1336_s28 = scalar_lea.vmem %s1335_s27, 256  ;;  %p1337_p13 = scmp.lt.s32.totalorder %s195_s5, %s1335_s27 }
  0x42   : > { %p1332_p9 = pnand %p1330_p7, %p1318_p0  ;;  %p1338_p5 = scmp.lt.s32.totalorder %s1336_s28, %s1329_s26 }
  0x44   : > { %p1333_p3 = pneg %p1332_p9  ;;  %p1339_p4 = por %p1338_p5, %p1337_p13 }
  0x46   : > { %p1340_p8 = pnand %p1339_p4, %p1333_p3 }
  0x48   : > { %1343 = shalt.err (!%p1340_p8)
}
  0x49   : > { %1195 = dma.hbm_to_vmem [thread:$0]  (!%p1552_p11), %s1550_s29, 128, %s195_s5, %s184_s7  }
  0x4a   : > { %p1750_p10 = scmp.ne.s32.totalorder %s1745_s23, 0 }
  0x4b   : > { %s1573_s30 = sand.u32 (!%p1750_p10), 1, %s1404_s16   ;;  %p1751_p4 = scmp.ne.s32.totalorder (!%p1750_p10), %s1743_s21, 0 }
  0x4c   : > { %203 = sbr.rel (%p1750_p10) target bundleno = 1335 (0x537), region = 36  ;;  %s1090_s8 = sshll.u32 (!%p1750_p10), %s1573_s30, 3 }
  0x4d   : > { %s206_s9 = scalar_lea.sflag (!%p1750_p10), [#allocation3], %s1573_s30  ;;  %s209_s10 = scalar_lea.vmem (!%p1750_p10), [#allocation2], %s1090_s8 }
  0x51   : > { %1387 = dma.done.wait (%p1751_p4), %s206_s9, 128  }
  0x52   : > { %1389 = vsyncadd (%p1751_p4), %s206_s9, 4294967168  ;;  %p1752_p8 = scmp.eq.s32.totalorder %s1476_s19, 0 }
  0x54   : > { %1391 = dma.done.wait (%p1752_p8), [#allocation6], 512   ;;  %p1753_p3 = pmov %p1752_p8 }
  0x55   : > { %v1419_v0 = vmov 0.0   ;;  %vm1420_vm0 = vmmov 0   ;;  %v1252_v1 = vld [vmem:[#allocation5 + $0x8] sm:$0xff]   ;;  %v1253_v2 = vld [vmem:[#allocation5] sm:$0xff]   ;;  %v243_v3 = vld [vmem:[%s209_s10] sm:$0xff]  ;;  %vm261_vm1 = vcmask 261120   ;;  %v326_v11 = vlaneseq }
  0x56   : > { %1393 = vsyncadd (%p1753_p3), [#allocation6], 4294966784  ;;  %1133 = vmatprep.subr.bf16.mxu0 %v1419_v0  ;;  %1137 = vmatprep.mubr.msk.bf16.mxu0 %vm1420_vm0, %v1419_v0  ;;  %v244_v4 = vpack.c.bf16 %v243_v3, %v243_v3  ;;  %s1421_s21 = smov 80   ;;  %s1422_s23 = smov 112   ;;  %v1424_v9 = vmov 1983009808  }
  0x57   : > { %1141 = vmatprep.subr.bf16.mxu1 %v1419_v0  ;;  %1143 = vmatprep.mubr.msk.bf16.mxu1 %vm1420_vm0, %v1419_v0  ;;  %s1423_s29 = smov 96   ;;  %v324_v10 = vunpack.c.l.s4 %v1424_v9  ;;  %v1425_v12 = vmov 1934713408   ;;  %v327_v15 = vshrl.u32 %v326_v11, 7  ;;  %vm579_vm2 = vcmask 130048   ;;  %s1426_s5 = smov 48  }
  0x58   : > { %1134 = vmatpush3.bf16.msra.mxu0 %v1252_v1  ;;  %v386_v13 = vunpack.c.l.s4 %v1425_v12  ;;  %vm672_vm3 = vcmask 64512   ;;  %s1427_s6 = smov 64   ;;  %vm696_vm4 = vcmask 1043456   ;;  %s1428_s7 = smov 16  }
  0x59   : > { %1135 = vmatprep.subr.bf16.mxu0 %v1419_v0  ;;  %v325_v14 = vunpack.c.0.s8 %v324_v10  ;;  %s1116_s25 = sshll.u32 %s1476_s19, 7  ;;  %s241_s26 = scalar_lea.vmem [#allocation8], %s1090_s8 }
  0x5a   : > { %v387_v18 = vunpack.c.0.s8 %v386_v13  ;;  %s993_s24 = sshll.u32 %s241_s26, 4  ;;  %s1690_s9 = scalar_lea.hbm %s1738_s4, %s1116_s25  ;;  %s1692_s24 = int_to_ptr.vmem [resolvable:$true] %s993_s24 }
  0x5b   : > { %v1603_v19 = vsub.s32 %v325_v14, %v327_v15  ;;  %s980_s19 = scalar_lea.sflag [#allocation4], %s1573_s30  ;;  %s1344_s10 = scalar_lea.vmem %s1692_s24, 128 }
  0x5c   : > { %1136 = vmatpush3.bf16.msra.mxu0 %v1253_v2  ;;  %v1607_v25 = vsub.s32 %v387_v18, %v327_v15  ;;  %p1345_p11 = scmp.ne.s32.totalorder %s1692_s24, %s1344_s10  ;;  %p1754_p0 = scmp.ne.s32.totalorder %s1748_s14, 0 }
  0x5d   : > { %1147 = vmatprep.subr.bf16.mxu0 %v1419_v0  ;;  %s1429_s8 = smov [#allocation8]  }
  0x5e   : > { %p1346_p1 = pnand %p1345_p11, %p1754_p0 }
  0x5f   : > { %1138 = vmatmul.mubr.msk.bf16.vlgmr.msra.gmra.mxu0 %vm261_vm1, %v244_v4 }
  0x60   : > { %1149 = vmatprep.mubr.msk.bf16.mxu0 %vm1420_vm0, %v1419_v0  ;;  %p1347_p2 = pneg %p1346_p1 }
 0x11f   : > { %v1598_v5 = vpop.f32.mrf.mxu0 }
 0x120   : > { %312 = vrot.lane.b32.xlu1 %v1598_v5, %s1421_s21  ;;  %306 = vrot.lane.b32.xlu0 %v1598_v5, %s1422_s23  ;;  %s1348_s21 = sshll.u32 %s1429_s8, 4  ;;  %s1349_s21 = int_to_ptr.vmem [resolvable:$false] %s1348_s21 }
 0x121   : > { %v1139_v6 = vpop.f32.mrf.mxu0  ;;  %s1350_s23 = scalar_lea.vmem %s1349_s21, 256  ;;  %p1351_p6 = scmp.lt.s32.totalorder %s1692_s24, %s1349_s21 }
 0x122   : > { %p1352_p12 = scmp.lt.s32.totalorder %s1350_s23, %s1344_s10 }
 0x123   : > { %v302_v7 = vpop.f32.mrf.mxu0 }
 0x124   : > { %309 = vrot.lane.b32.xlu0 %v1598_v5, %s1423_s29  ;;  %p1353_p7 = por %p1352_p12, %p1351_p6 }
 0x125   : > { %v1140_v8 = vpop.f32.mrf.mxu0 }
 0x126   : > { %p1354_p9 = pnand %p1353_p7, %p1347_p2 }
 0x192   : > { %v313_v16 = vpop.permute.xlu1 %312  ;;  %v307_v17 = vpop.permute.xlu0 %306 }
 0x193   : > { %v337_v20 = vcombine.low %v307_v17, %v313_v16  ;;  %v338_v21 = vcombine.high %v307_v17, %v313_v16 }
 0x195   : > { %v345_v26 = vrot.slane %v337_v20, %v1603_v19  ;;  %v352_v27 = vrot.slane %v338_v21, %v1603_v19 }
 0x196   : > { %v310_v22 = vpop.permute.xlu0 %309 }
 0x197   : > { %v321_v23 = vcombine.low %v1598_v5, %v310_v22  ;;  %v322_v24 = vcombine.high %v1598_v5, %v310_v22 }
 0x199   : > { %v329_v28 = vrot.slane %v321_v23, %v1603_v19  ;;  %v336_v29 = vrot.slane %v322_v24, %v1603_v19 }
 0x19b   : > { %v383_v30 = vcombine.low %v329_v28, %v345_v26  ;;  %v384_v31 = vcombine.high %v329_v28, %v345_v26  ;;  %v399_v32 = vcombine.low %v336_v29, %v352_v27  ;;  %v400_v33 = vcombine.high %v336_v29, %v352_v27 }
 0x19d   : > { %v391_v34 = vrot.slane %v383_v30, %v1607_v25  ;;  %v398_v35 = vrot.slane %v384_v31, %v1607_v25  ;;  %v407_v36 = vrot.slane %v399_v32, %v1607_v25  ;;  %v414_v37 = vrot.slane %v400_v33, %v1607_v25 }
 0x19f   : > { %v1097_v38 = vcombine.low %v391_v34, %v398_v35  ;;  %v1099_v39 = vcombine.high %v391_v34, %v398_v35  ;;  %v1101_v40 = vcombine.low %v407_v36, %v414_v37  ;;  %v1103_v41 = vcombine.high %v407_v36, %v414_v37 }
 0x1a1   : > { %v463_v42 = vrot.slane %v1097_v38, %v1603_v19  ;;  %v479_v43 = vrot.slane %v1099_v39, %v1603_v19  ;;  %v495_v44 = vrot.slane %v1101_v40, %v1603_v19  ;;  %v511_v45 = vrot.slane %v1103_v41, %v1603_v19 }
 0x1a3   : > { %v520_v46 = vcombine.high %v463_v42, %v479_v43  ;;  %v544_v47 = vcombine.high %v495_v44, %v511_v45  ;;  %v519_v48 = vcombine.low %v463_v42, %v479_v43  ;;  %v543_v50 = vcombine.low %v495_v44, %v511_v45 }
 0x1a5   : > { %v534_v49 = vrot.slane %v520_v46, %v1607_v25  ;;  %v558_v51 = vrot.slane %v544_v47, %v1607_v25  ;;  %v527_v56 = vrot.slane %v519_v48, %v1607_v25  ;;  %v551_v57 = vrot.slane %v543_v50, %v1607_v25 }
 0x1a7   : > { %v569_v52 = vcombine.low %v534_v49, %v558_v51  ;;  %v570_v53 = vcombine.high %v534_v49, %v558_v51  ;;  %v567_v60 = vcombine.low %v527_v56, %v551_v57  ;;  %v568_v61 = vcombine.high %v527_v56, %v551_v57 }
 0x1a9   : > { %v575_v54 = vpack.c.bf16 %v569_v52, %v569_v52  ;;  %v576_v55 = vpack.c.bf16 %v570_v53, %v570_v53  ;;  %v573_v62 = vpack.c.bf16 %v567_v60, %v567_v60  ;;  %v574_v63 = vpack.c.bf16 %v568_v61, %v568_v61 }
 0x1ab   : > { %v584_v58 = vsel %vm579_vm2, %v575_v54, 0  ;;  %v630_v59 = vsel %vm579_vm2, %v576_v55, 0 }
 0x1ac   : > { %1142 = vmatpush3.bf16.xpose.msra.mxu1 %v584_v58  ;;  %1148 = vmatpush3.bf16.xpose.msra.mxu0 %v630_v59  ;;  %v1254_v59 = vld [vmem:[#allocation7 + $0x8] sm:$0xff]  }
 0x1ad   : > { %1153 = vmatprep.subr.bf16.mxu1 %v1419_v0  ;;  %1159 = vmatprep.subr.bf16.mxu0 %v1419_v0 }
 0x1b3   : > { %1144 = vmatmul.mubr.msk.bf16.vlgmr.msra.gmra.mxu1 %vm579_vm2, %v573_v62  ;;  %1150 = vmatmul.mubr.msk.bf16.vlgmr.msra.gmra.mxu0 %vm579_vm2, %v574_v63 }
 0x1b4   : > { %1155 = vmatprep.mubr.msk.bf16.mxu1 %vm1420_vm0, %v1419_v0  ;;  %1161 = vmatprep.mubr.msk.bf16.mxu0 %vm1420_vm0, %v1419_v0 }
 0x273   : > { %v620_v1 = vpop.f32.mrf.mxu1  ;;  %v666_v2 = vpop.f32.mrf.mxu0 }
 0x274   : > { %v673_v3 = vsel %vm672_vm3, %v620_v1, -inf  ;;  %v676_v4 = vsel %vm672_vm3, %v666_v2, -inf }
 0x275   : > { %674 = vmax.xlane.f32.xlu1 %v673_v3  ;;  %v1145_v6 = vpop.f32.mrf.mxu1  ;;  %677 = vmax.xlane.f32.xlu0 %v676_v4  ;;  %v1151_v7 = vpop.f32.mrf.mxu0 }
 0x277   : > { %v623_v8 = vpop.f32.mrf.mxu1  ;;  %v669_v9 = vpop.f32.mrf.mxu0 }
 0x279   : > { %v1146_v10 = vpop.f32.mrf.mxu1  ;;  %v1152_v11 = vpop.f32.mrf.mxu0 }
 0x286   : > { %318 = vrot.lane.b32.xlu1 %v1598_v5, %s1426_s5 }
 0x28b   : > { %315 = vrot.lane.b32.xlu0 %v1598_v5, %s1427_s6 }
 0x2fe   : > { %v675_v12 = vpop.xlane.xlu1 %674  ;;  %v678_v13 = vpop.xlane.xlu0 %677 }
 0x2ff   : > { %v679_v14 = vsub.f32 %v620_v1, %v675_v12  ;;  %v680_v15 = vsub.f32 %v666_v2, %v678_v13 }
 0x301   : > { %v681_v16 = vmul.f32 1.442695, %v679_v14  ;;  %v683_v17 = vmul.f32 1.442695, %v680_v15 }
 0x302   : > { %v319_v18 = vpop.permute.xlu1 %318  ;;  %v316_v20 = vpop.permute.xlu0 %315 }
 0x303   : > { %1256 = vpow2.f32 %v681_v16  ;;  %v368_v21 = vcombine.high %v319_v18, %v1419_v0  ;;  %v375_v22 = vrot.slane %v319_v18, %v1603_v19  ;;  %v353_v23 = vcombine.high %v316_v20, %v1419_v0 }
 0x304   : > { %1258 = vpow2.f32 %v683_v17  ;;  %v360_v24 = vrot.slane %v316_v20, %v1603_v19 }
 0x305   : > { %v382_v5 = vrot.slane %v368_v21, %v1603_v19  ;;  %v367_v26 = vrot.slane %v353_v23, %v1603_v19 }
 0x306   : > { %v415_v27 = vcombine.low %v360_v24, %v375_v22  ;;  %v416_v28 = vcombine.high %v360_v24, %v375_v22 }
 0x307   : > { %v431_v29 = vcombine.low %v367_v26, %v382_v5  ;;  %v432_v30 = vcombine.high %v367_v26, %v382_v5  ;;  %v1255_v5 = vld [vmem:[#allocation7] sm:$0xff]  }
 0x308   : > { %v423_v31 = vrot.slane %v415_v27, %v1607_v25  ;;  %v430_v32 = vrot.slane %v416_v28, %v1607_v25 }
 0x309   : > { %v439_v33 = vrot.slane %v431_v29, %v1607_v25  ;;  %v446_v34 = vrot.slane %v432_v30, %v1607_v25 }
 0x30a   : > { %v1098_v35 = vcombine.low %v423_v31, %v430_v32  ;;  %v1100_v36 = vcombine.high %v423_v31, %v430_v32 }
 0x30b   : > { %v1102_v37 = vcombine.low %v439_v33, %v446_v34  ;;  %v1104_v38 = vcombine.high %v439_v33, %v446_v34 }
 0x30c   : > { %v470_v39 = vrot.slane %v1098_v35, %v1603_v19  ;;  %v486_v40 = vrot.slane %v1100_v36, %v1603_v19 }
 0x30d   : > { %v502_v41 = vrot.slane %v1102_v37, %v1603_v19  ;;  %v518_v42 = vrot.slane %v1104_v38, %v1603_v19 }
 0x30e   : > { %v535_v43 = vcombine.low %v470_v39, %v486_v40 }
 0x30f   : > { %v559_v44 = vcombine.low %v502_v41, %v518_v42 }
 0x310   : > { %v1257_v45 = vpop.eup %1256  ;;  %v542_v48 = vrot.slane %v535_v43, %v1607_v25 }
 0x311   : > { %v1259_v46 = vpop.eup %1258  ;;  %v685_v47 = vsel %vm672_vm3, %v1257_v45, 0.0  ;;  %v566_v49 = vrot.slane %v559_v44, %v1607_v25  ;;  %v691_v57 = vpack.c.bf16 %v1257_v45, %v1257_v45 }
 0x312   : > { %686 = vadd.xlane.f32.xlu1 %v685_v47  ;;  %v688_v50 = vsel %vm672_vm3, %v1259_v46, 0.0  ;;  %v692_v58 = vpack.c.bf16 %v1259_v46, %v1259_v46 }
 0x313   : > { %689 = vadd.xlane.f32.xlu0 %v688_v50  ;;  %v571_v51 = vcombine.low %v542_v48, %v566_v49  ;;  %v572_v52 = vcombine.high %v542_v48, %v566_v49 }
 0x315   : > { %v577_v53 = vpack.c.bf16 %v571_v51, %v571_v51  ;;  %v578_v54 = vpack.c.bf16 %v572_v52, %v572_v52 }
 0x317   : > { %v698_v55 = vsel %vm696_vm4, %v577_v53, 0  ;;  %v744_v56 = vsel %vm696_vm4, %v578_v54, 0 }
 0x318   : > { %1154 = vmatpush3.bf16.msra.mxu1 %v698_v55  ;;  %1160 = vmatpush3.bf16.msra.mxu0 %v744_v56 }
 0x319   : > { %1165 = vmatprep.subr.bf16.mxu1 %v1419_v0 }
 0x31b   : > { %1156 = vmatmul.mubr.msk.bf16.vlgmr.msra.gmra.mxu1 %vm672_vm3, %v691_v57  ;;  %1162 = vmatmul.mubr.msk.bf16.vlgmr.msra.gmra.mxu0 %vm672_vm3, %v692_v58 }
 0x31c   : > { %1169 = vmatprep.mubr.msk.bf16.mxu1 %vm1420_vm0, %v1419_v0  ;;  %1166 = vmatpush3.bf16.msra.mxu1 %v1254_v59 }
 0x31d   : > { %1167 = vmatprep.subr.bf16.mxu1 %v1419_v0 }
 0x320   : > { %1168 = vmatpush3.bf16.msra.mxu1 %v1255_v5 }
 0x39b   : > { %v687_v60 = vpop.xlane.xlu1 %686 }
 0x39c   : > { %v690_v61 = vpop.xlane.xlu0 %689  ;;  %1260 = vrcp.f32 %v687_v60 }
 0x39d   : > { %1262 = vrcp.f32 %v690_v61 }
 0x3a9   : > { %v1261_v62 = vpop.eup %1260 }
 0x3aa   : > { %v1263_v63 = vpop.eup %1262 }
 0x3db   : > { %v734_v1 = vpop.f32.mrf.mxu1  ;;  %v780_v2 = vpop.f32.mrf.mxu0 }
 0x3dc   : > { %v788_v3 = vmul.f32 %v1261_v62, %v734_v1  ;;  %v789_v4 = vmul.f32 %v1263_v63, %v780_v2 }
 0x3dd   : > { %v1157_v6 = vpop.f32.mrf.mxu1  ;;  %v1163_v7 = vpop.f32.mrf.mxu0 }
 0x3de   : > { %v790_v8 = vcombine.high %v788_v3, %v1419_v0  ;;  %v797_v9 = vrot.slane %v788_v3, %v1603_v19  ;;  %v805_v10 = vcombine.high %v789_v4, %v1419_v0  ;;  %v812_v11 = vrot.slane %v789_v4, %v1603_v19 }
 0x3df   : > { %v737_v12 = vpop.f32.mrf.mxu1  ;;  %v783_v13 = vpop.f32.mrf.mxu0 }
 0x3e0   : > { %v804_v14 = vrot.slane %v790_v8, %v1603_v19  ;;  %v819_v15 = vrot.slane %v805_v10, %v1603_v19  ;;  %v820_v16 = vcombine.low %v797_v9, %v812_v11  ;;  %v821_v17 = vcombine.high %v797_v9, %v812_v11 }
 0x3e1   : > { %v1158_v18 = vpop.f32.mrf.mxu1  ;;  %v1164_v20 = vpop.f32.mrf.mxu0 }
 0x3e2   : > { %v828_v21 = vrot.slane %v820_v16, %v1607_v25  ;;  %v835_v22 = vrot.slane %v821_v17, %v1607_v25  ;;  %v836_v23 = vcombine.low %v804_v14, %v819_v15  ;;  %v837_v24 = vcombine.high %v804_v14, %v819_v15 }
 0x3e4   : > { %v844_v0 = vrot.slane %v836_v23, %v1607_v25  ;;  %v851_v26 = vrot.slane %v837_v24, %v1607_v25  ;;  %v856_v27 = vcombine.low %v828_v21, %v835_v22  ;;  %v1109_v28 = vcombine.high %v828_v21, %v835_v22 }
 0x3e6   : > { %v872_v29 = vcombine.low %v844_v0, %v851_v26  ;;  %v1110_v30 = vcombine.high %v844_v0, %v851_v26  ;;  %v863_v31 = vrot.slane %v856_v27, %v1603_v19  ;;  %v871_v32 = vrot.slane %v1109_v28, %v1603_v19 }
 0x3e8   : > { %v879_v33 = vrot.slane %v872_v29, %v1603_v19  ;;  %v887_v34 = vrot.slane %v1110_v30, %v1603_v19  ;;  %v888_v35 = vcombine.low %v863_v31, %v871_v32  ;;  %v1111_v19 = vld [vmem:[%s1737_s3] ss:$0 sm:$0xff] }
 0x3ea   : > { %v896_v36 = vcombine.low %v879_v33, %v887_v34  ;;  %v895_v37 = vrot.slane %v888_v35, %v1607_v25 }
 0x3ec   : > { %v903_v38 = vrot.slane %v896_v36, %v1607_v25 }
 0x3ee   : > { %v905_v39 = vcombine.high %v895_v37, %v903_v38  ;;  %v904_v40 = vcombine.low %v895_v37, %v903_v38 }
 0x3f0   : > { %907 = vrot.lane.b32.xlu0 %v905_v39, %s1428_s7 }
 0x462   : > { %v908_v41 = vpop.permute.xlu0 %907 }
 0x463   : > { %v910_v42 = vsel %vm579_vm2, %v904_v40, %v908_v41 }
 0x464   : > { %v911_v43 = vpack.c.bf16 %v910_v42, %v910_v42 }
 0x466   : > { %1170 = vmatmul.mubr.msk.bf16.vlgmr.msra.gmra.mxu1 %vm261_vm1, %v911_v43 }
 0x526   : > { %v972_v25 = vpop.f32.mrf.mxu1 }
 0x527   : > { %v973_v44 = vadd.f32 %v1111_v19, %v972_v25 }
 0x528   : > { %v1171_v45 = vpop.f32.mrf.mxu1 }
 0x529   : > { %978 = vst.msk [vmem:[%s241_s26] sm:$0xff] %vm261_vm1, %v973_v44 }
 0x52a   : > { %v975_v46 = vpop.f32.mrf.mxu1 }
 0x52b   : > { %1357 = shalt.err (!%p1354_p9)
}
 0x52c   : > { %s1358_s29 = scalar_lea.hbm %s1690_s9, 128  ;;  %s1362_s6 = scalar_lea.hbm %s1738_s4, 256 }
 0x52d   : > { %p1359_p13 = scmp.ne.s32.totalorder %s1690_s9, %s1358_s29  ;;  %p1363_p4 = scmp.lt.s32.totalorder %s1690_s9, %s1738_s4 }
 0x52e   : > { %p1364_p8 = scmp.lt.s32.totalorder %s1362_s6, %s1358_s29 }
 0x52f   : > { %p1360_p5 = pnand %p1359_p13, %p1754_p0 }
 0x530   : > { %p1365_p3 = por %p1364_p8, %p1363_p4 }
 0x531   : > { %p1361_p10 = pneg %p1360_p5 }
 0x533   : > { %p1366_p11 = pnand %p1365_p3, %p1361_p10 }
 0x535   : > { %1369 = shalt.err (!%p1366_p11)
}
 0x536   : > { %1183 = dma.vmem_to_hbm [thread:$0]  (%p1754_p0), %s1692_s24, 128, %s1690_s9, %s980_s19   ;;  %v1172_v47 = vpop.f32.mrf.mxu1 }
 0x537 PF: > { %s1005_s13 = sand.u32 1, %s1400_s15   ;;  %p1755_p1 = scmp.ne.s32.totalorder %s1744_s22, 0 }
 0x538   : > { %p1756_p2 = scmp.ge.s32.totalorder %s1412_s18, 2  ;;  %s1006_s25 = scalar_lea.sflag [#allocation4], %s1005_s13 }
 0x53a   : > { %p1197_p6 = pnand %p1756_p2, %p1755_p1 }
 0x53c   : > { %p1198_p12 = pneg %p1197_p6 }
 0x53e   : > { %1395 = dma.done.wait (%p1198_p12), %s1006_s25, 128  }
 0x53f   : > { %1397 = vsyncadd (%p1198_p12), %s1006_s25, 4294967168  ;;  %p18_p7 = scmp.ge.s32.totalorder %s1527_s11, 4   ;;  %s1757_s15 = smov %s1404_s16 }
 0x540   : > { %s1758_s16 = smov %s1408_s17  ;;  %s1759_s17 = smov %s1543_s20 }
 0x541   : > { %s1760_s18 = smov %s1527_s11  ;;  %20 = sbr.rel (!%p18_p7) target bundleno = 6 (0x6), region = 89 }
 0x546   :  { %1011 = vsyncpa [#allocation3], 1 }
 0x547   :  { %1013 = vsyncpa [#allocation3 + $0x1], 1 }
 0x548   :  { %1014 = vsyncpa [#allocation6], 1 }
 0x549   :  { %1015 = vsyncpa [#allocation4], 1 }
 0x54a   :  { %1017 = vsyncpa [#allocation4 + $0x1], 1 }

</bundles_post_ra>
